<compile_context>
chip_gen: v5e
topology: v5e:2x2
jax: 0.10.0
libtpu: 0.0.40
codegen_flags: <defaults>
</compile_context>

<pallas_src>
import functools

import jax
import jax.numpy as jnp
from jax import lax
from jax.experimental import pallas as pl
from jax.experimental.pallas import tpu as pltpu


def _round_up(v, m):
    return ((v + m - 1) // m) * m


def _vmem_capacity_bytes():
    """Best-effort physical VMEM query; conservative fallback (v7x per-TC)."""
    try:
        info = pltpu.get_tpu_info()
        return int(getattr(info, "vmem_capacity_bytes", 64 * 1024 * 1024))
    except Exception:
        return 64 * 1024 * 1024


_VMEM_BYTES = _vmem_capacity_bytes()
if _VMEM_BYTES >= 128 * 1024 * 1024:
    # v5e / v6e: 128 MiB VMEM -> go big to cut operand re-reads and k steps.
    _MAX_TM, _MAX_TN, _MAX_TK = 1024, 1024, 1024
    _VMEM_LIMIT = 96 * 1024 * 1024
else:
    # v7x (64 MiB per TensorCore) or unknown: keep the double-buffered
    # footprint well under ~40 MiB so full pipelining depth is preserved.
    _MAX_TM, _MAX_TN, _MAX_TK = 512, 512, 1024
    _VMEM_LIMIT = 48 * 1024 * 1024

# Descending tile candidates (kept (8,128)-aligned: tm multiple of 8, tn/tk of 128).
_TM_CANDIDATES = tuple(sorted({t for t in (_MAX_TM, 512, 256, 128, 64, 32, 16, 8)
                               if t <= _MAX_TM}, reverse=True))
_TN_CANDIDATES = tuple(sorted({t for t in (_MAX_TN, 512, 256, 128)
                               if t <= _MAX_TN}, reverse=True))
_TK_CANDIDATES = tuple(sorted({t for t in (_MAX_TK, 1024, 512, 256, 128)
                               if t <= _MAX_TK}, reverse=True))


def _pick_tile(dim, candidates, align):
    """Largest candidate whose padding waste stays <= ~25% over minimal padding."""
    aligned = _round_up(max(dim, 1), align)
    for t in candidates:  # descending preference
        if t > aligned:
            continue
        if _round_up(dim, t) * 4 <= aligned * 5:
            return t
    return aligned  # unreachable in practice; kept for safety


def _matmul_kernel(x_ref, y_ref, o_ref):
    # x_ref: (tm, tk), y_ref: (tn, tk) -> contract last dims (A @ B.T) on the MXU.
    # The output block is resident across the K grid axis, so accumulate into it
    # directly (f32 output == f32 accumulator); no scratch, no epilogue copy.
    @pl.when(pl.program_id(2) == 0)
    def _():
        o_ref[...] = jnp.zeros_like(o_ref)

    o_ref[...] += lax.dot_general(
        x_ref[...],
        y_ref[...],
        dimension_numbers=(((1,), (1,)), ((), ())),
        preferred_element_type=jnp.float32,
    )


@functools.partial(jax.jit, static_argnames=("tm", "tn", "tk"))
def linear(x, y, *, tm=None, tn=None, tk=None):
    """Pallas equivalent of torch.mm(x, y.t())."""
    N, K = x.shape
    M, K2 = y.shape
    assert K == K2, "inner dimensions must match"

    # ---- static tile selection (shapes are concrete Python ints under jit) ----
    tm = tm if tm is not None else _pick_tile(N, _TM_CANDIDATES, 8)
    tn = tn if tn is not None else _pick_tile(M, _TN_CANDIDATES, 128)
    tk = tk if tk is not None else _pick_tile(K, _TK_CANDIDATES, 128)

    Np = _round_up(N, tm)

    # v7x megacore guard: with a single i block, make sure the (parallel) j axis
    # has >= 2 blocks so both TensorCores get work. No-op on 1-TC chips.
    if Np <= tm and M >= 256:
        half = (_round_up(M, 128) // 2) // 128 * 128
        if half >= 128:
            tn = min(tn, half)

    Mp = _round_up(M, tn)
    Kp = _round_up(K, tk)

    # K is zero-padded so the reduction stays exact; padded N/M rows/cols are
    # sliced off at the end. Pads are skipped entirely when shapes already fit.
    if (Np, Kp) != (N, K):
        x = jnp.pad(x, ((0, Np - N), (0, Kp - K)))
    if (Mp, Kp) != (M, K):
        y = jnp.pad(y, ((0, Mp - M), (0, Kp - K)))

    grid = (Np // tm, Mp // tn, Kp // tk)

    out_padded = pl.pallas_call(
        _matmul_kernel,
        out_shape=jax.ShapeDtypeStruct((Np, Mp), jnp.float32),
        grid_spec=pltpu.PrefetchScalarGridSpec(
            num_scalar_prefetch=0,
            grid=grid,
            in_specs=[
                pl.BlockSpec((tm, tk), lambda i, j, k: (i, k)),
                pl.BlockSpec((tn, tk), lambda i, j, k: (j, k)),
            ],
            # Output index_map ignores k -> the (tm, tn) tile stays resident in
            # VMEM across the whole K reduction and acts as the accumulator.
            out_specs=pl.BlockSpec((tm, tn), lambda i, j, k: (i, j)),
        ),
        compiler_params=pltpu.CompilerParams(
            dimension_semantics=("parallel", "parallel", "arbitrary"),
            vmem_limit_bytes=_VMEM_LIMIT,
        ),
        cost_estimate=pl.CostEstimate(
            flops=2 * N * M * K,
            transcendentals=0,
            bytes_accessed=4 * (N * K + M * K + N * M),
        ),
    )(x, y)

    # TODO(synk): optional bf16 operand path (f32 accumulation) for 3-8x MXU
    # rate when the model tolerates it; kept f32 to match torch.mm exactly.
    if (Np, Mp) != (N, M):
        return out_padded[:N, :M]
    return out_padded


if __name__ == "__main__":
    key = jax.random.PRNGKey(0)
    kx, ky = jax.random.split(key)

    # Small shapes consistent with the module: x (8, 32), y (16, 32) -> out (8, 16).
    x = jax.random.normal(kx, (8, 32), dtype=jnp.float32)
    y = jax.random.normal(ky, (16, 32), dtype=jnp.float32)

    out = linear(x, y)
    jax.block_until_ready(out)
    ref = x @ y.T
    assert out.shape == (8, 16)
    assert jnp.allclose(out, ref, atol=1e-5, rtol=1e-5)

    # Exercise the non-multiple (padded / aligned) path too.
    kx2, ky2 = jax.random.split(ky)
    x2 = jax.random.normal(kx2, (13, 70), dtype=jnp.float32)
    y2 = jax.random.normal(ky2, (50, 70), dtype=jnp.float32)
    out2 = linear(x2, y2)
    jax.block_until_ready(out2)
    assert out2.shape == (13, 50)
    assert jnp.allclose(out2, x2 @ y2.T, atol=1e-5, rtol=1e-5)

    print("KERNEL_OK")
</pallas_src>

<mosaic_0001>
module attributes {stable_mosaic.version = 11 : i64} {
  func.func @_matmul_kernel(%arg0: i32, %arg1: i32, %arg2: i32, %arg3: memref<8x128xf32, #tpu.memory_space<vmem>>, %arg4: memref<128x128xf32, #tpu.memory_space<vmem>>, %arg5: memref<8x128xf32, #tpu.memory_space<vmem>>) attributes {dimension_semantics = [#tpu.dimension_semantics<parallel>, #tpu.dimension_semantics<parallel>, #tpu.dimension_semantics<arbitrary>], iteration_bounds = array<i64: 1, 1, 1>, scalar_prefetch = 0 : i64, scratch_operands = 0 : i64, tpu.core_type = #tpu.core_type<tc>, window_params = [{transform_indices = @transform_0, window_bounds = array<i64: 8, 128>}, {transform_indices = @transform_1, window_bounds = array<i64: 128, 128>}, {transform_indices = @transform_2, window_bounds = array<i64: 8, 128>}]} {
    %c0_i32 = arith.constant 0 : i32
    %0 = arith.cmpi eq, %arg2, %c0_i32 : i32
    %1 = arith.extui %0 : i1 to i32
    %c0_i32_0 = arith.constant 0 : i32
    %2 = arith.cmpi ne, %1, %c0_i32_0 : i32
    scf.if %2 {
      %cst_8 = arith.constant 0.000000e+00 : f32
      %9 = vector.broadcast %cst_8 : f32 to vector<8x128xf32>
      %c0_9 = arith.constant 0 : index
      %c0_10 = arith.constant 0 : index
      %10 = vector.load %arg5[%c0_9, %c0_10] : memref<8x128xf32, #tpu.memory_space<vmem>>, vector<8x128xf32>
      tpu.vector_store %arg5[%c0_9, %c0_10], %9 {strides = array<i32>} : memref<8x128xf32, #tpu.memory_space<vmem>>, vector<8x128xf32>,
    } else {
    }
    %c0 = arith.constant 0 : index
    %c0_1 = arith.constant 0 : index
    %3 = vector.load %arg5[%c0, %c0_1] : memref<8x128xf32, #tpu.memory_space<vmem>>, vector<8x128xf32>
    %c0_2 = arith.constant 0 : index
    %c0_3 = arith.constant 0 : index
    %4 = vector.load %arg3[%c0_2, %c0_3] : memref<8x128xf32, #tpu.memory_space<vmem>>, vector<8x128xf32>
    %c0_4 = arith.constant 0 : index
    %c0_5 = arith.constant 0 : index
    %5 = vector.load %arg4[%c0_4, %c0_5] : memref<128x128xf32, #tpu.memory_space<vmem>>, vector<128x128xf32>
    %cst = arith.constant dense<0.000000e+00> : vector<8x128xf32>
    %6 = tpu.matmul %4, %5, %cst {dimension_numbers = #tpu.dot_dimension_numbers<[1], [1], [0], [0], [0, 0, 1, 0], [], []>} : vector<8x128xf32>, vector<128x128xf32>, vector<8x128xf32> -> vector<8x128xf32>
    %7 = arith.addf %3, %6 : vector<8x128xf32>
    %c0_6 = arith.constant 0 : index
    %c0_7 = arith.constant 0 : index
    %8 = vector.load %arg5[%c0_6, %c0_7] : memref<8x128xf32, #tpu.memory_space<vmem>>, vector<8x128xf32>
    tpu.vector_store %arg5[%c0_6, %c0_7], %7 {strides = array<i32>} : memref<8x128xf32, #tpu.memory_space<vmem>>, vector<8x128xf32>,
    return
  }
  func.func @transform_0(%arg0: i32, %arg1: i32, %arg2: i32) -> (i32, i32) {
    %c0_i32 = arith.constant 0 : i32
    return %arg0, %arg2 : i32, i32
  }
  func.func @transform_1(%arg0: i32, %arg1: i32, %arg2: i32) -> (i32, i32) {
    %c0_i32 = arith.constant 0 : i32
    return %arg1, %arg2 : i32, i32
  }
  func.func @transform_2(%arg0: i32, %arg1: i32, %arg2: i32) -> (i32, i32) {
    %c0_i32 = arith.constant 0 : i32
    return %arg0, %arg1 : i32, i32
  }
}

</mosaic_0001>

<bundles_post_ra>
// kernel: linear.1
= control target key start
LH: loop header
LB: loop body
LE: loop exit
PB: predicated region body
PF: predicated region fallthrough
CT: control target
= control target key end

     0   :  { %s171_s0 = inlined_call_operand.vmem [shape: f32[8,128], index: 0, kind: input, shape index: {}]   ;;  %s172_s1 = inlined_call_operand.vmem [shape: f32[128,128], index: 1, kind: input, shape index: {}]   ;;  %s173_s2 = inlined_call_operand.hbm [shape: f32[8,128], index: 2, kind: output, shape index: {}]  }
   0x1   :  { %v34_v0 = vld [vmem:[%s172_s1 + $0x78] sm:$0xff]  ;;  %v33_v1 = vld [vmem:[%s172_s1 + $0x70] sm:$0xff] }
   0x2   :  { %35 = vmatpush.xpose.msra.mxu0 %v34_v0 }
   0x3   :  { %7 = vsyncpa [#allocation3], 0  ;;  %v32_v2 = vld [vmem:[%s172_s1 + $0x68] sm:$0xff]  ;;  %v31_v3 = vld [vmem:[%s172_s1 + $0x60] sm:$0xff]  ;;  %s101_s15 = smov [#allocation2]   ;;  %s64_s19 = sshll.u32 %s173_s2, 4  ;;  %s65_s19 = int_to_ptr.hbm [resolvable:$true] %s64_s19 }
   0x4   :  { %v30_v4 = vld [vmem:[%s172_s1 + $0x58] sm:$0xff]  ;;  %v29_v5 = vld [vmem:[%s172_s1 + $0x50] sm:$0xff]  ;;  %v28_v6 = vld [vmem:[%s172_s1 + $0x48] sm:$0xff]  ;;  %s62_s16 = sshll.u32 %s101_s15, 4  ;;  %s63_s16 = int_to_ptr.vmem [resolvable:$true] %s62_s16 }
   0x5   :  { %v27_v7 = vld [vmem:[%s172_s1 + $0x40] sm:$0xff]  ;;  %v26_v8 = vld [vmem:[%s172_s1 + $0x38] sm:$0xff]  ;;  %v25_v9 = vld [vmem:[%s172_s1 + $0x30] sm:$0xff] }
   0x6   :  { %36 = vmatpush.xpose.msra.mxu0 %v33_v1  ;;  %v24_v10 = vld [vmem:[%s172_s1 + $0x28] sm:$0xff]  ;;  %v23_v11 = vld [vmem:[%s172_s1 + $0x20] sm:$0xff]  ;;  %v22_v12 = vld [vmem:[%s172_s1 + $0x18] sm:$0xff] }
   0x7   :  { %v21_v13 = vld [vmem:[%s172_s1 + $0x10] sm:$0xff]  ;;  %v20_v14 = vld [vmem:[%s172_s1 + $0x8] sm:$0xff]  ;;  %v19_v15 = vld [vmem:[%s172_s1] sm:$0xff] }
   0x8   :  { %v18_v16 = vld [vmem:[%s171_s0] sm:$0xff] }
   0xa   :  { %37 = vmatpush.xpose.msra.mxu0 %v32_v2 }
   0xe   :  { %38 = vmatpush.xpose.msra.mxu0 %v31_v3 }
  0x12   :  { %39 = vmatpush.xpose.msra.mxu0 %v30_v4 }
  0x16   :  { %40 = vmatpush.xpose.msra.mxu0 %v29_v5 }
  0x1a   :  { %41 = vmatpush.xpose.msra.mxu0 %v28_v6 }
  0x1e   :  { %42 = vmatpush.xpose.msra.mxu0 %v27_v7 }
  0x22   :  { %43 = vmatpush.xpose.msra.mxu0 %v26_v8 }
  0x26   :  { %44 = vmatpush.xpose.msra.mxu0 %v25_v9 }
  0x2a   :  { %45 = vmatpush.xpose.msra.mxu0 %v24_v10 }
  0x2e   :  { %46 = vmatpush.xpose.msra.mxu0 %v23_v11 }
  0x32   :  { %47 = vmatpush.xpose.msra.mxu0 %v22_v12 }
  0x36   :  { %48 = vmatpush.xpose.msra.mxu0 %v21_v13 }
  0x3a   :  { %49 = vmatpush.xpose.msra.mxu0 %v20_v14 }
  0x3e   :  { %50 = vmatpush.xpose.msra.mxu0 %v19_v15 }
  0x41   :  { %51 = vmatmul.f32.vlgmr.msra.gmra.mxu0 %v18_v16 }
  0xbe   :  { %v52_v17 = vpop.f32.mrf.mxu0 }
  0xbf   :  { %56 = vst [vmem:[#allocation2] sm:$0xff] %v52_v17 }
  0xc0   :  { %67 = dma.vmem_to_hbm [thread:$0]  %s63_s16, 128, %s65_s19, [#allocation3]  }
  0xc1   :  { %99 = dma.done.wait [#allocation3], 128  }
  0xc2   :  { %100 = vsyncadd [#allocation3], 4294967168 }
  0xc3   :  { %72 = vsyncpa [#allocation3], 1 }

</bundles_post_ra>
